<compile_context>
chip_gen: v7x
topology: tpu7x:2x2x1
jax: 0.10.0
libtpu: 0.0.40
codegen_flags: <defaults>
</compile_context>

<pallas_src>
import jax
import jax.numpy as jnp
from jax.experimental import pallas as pl
from jax.experimental.pallas import tpu as pltpu


def _round_up(x, m):
    return ((x + m - 1) // m) * m


def _largest_aligned_divisor(n, align, target):
    """Largest d <= target with d % align == 0 and n % d == 0 (n % align == 0)."""
    d = min(target, n)
    d -= d % align
    while d > align:
        if n % d == 0:
            return d
        d -= align
    return align


# --------------------------------------------------------------------------
# Small-problem fast path: one full-array block, no padding, no K loop.
# --------------------------------------------------------------------------
def _small_linear_kernel(x_ref, w_ref, b_ref, o_ref):
    o_ref[...] = (
        jnp.dot(x_ref[...], w_ref[...], preferred_element_type=jnp.float32)
        + b_ref[...]
    ).astype(o_ref.dtype)


def _small_linear(x, weight, bias):
    B, _ = x.shape
    O = weight.shape[1]
    return pl.pallas_call(
        _small_linear_kernel,
        out_shape=jax.ShapeDtypeStruct((B, O), jnp.float32),
    )(x, weight, bias.reshape(1, O))


# --------------------------------------------------------------------------
# Tiled path: grid = (M tiles, N tiles, K tiles), accumulate in o_ref (f32).
# --------------------------------------------------------------------------
def _tiled_linear_kernel(x_ref, w_ref, b_ref, o_ref):
    k = pl.program_id(2)

    @pl.when(k == 0)
    def _():
        # Seed the resident output block with the bias (f32).
        o_ref[...] = jnp.broadcast_to(b_ref[...], o_ref.shape).astype(o_ref.dtype)

    o_ref[...] += jnp.dot(
        x_ref[...], w_ref[...], preferred_element_type=jnp.float32
    )


def prepare_linear_params(weight, bias, *, use_bf16_inputs=True):
    """Pad/cast the static fc parameters ONCE (outside the per-call forward).

    weight: [F, O] float32 (transposed from PyTorch's [O, F]); bias: [O].
    """
    F, O = weight.shape
    Fp = _round_up(F, 128)
    Op = _round_up(O, 128)
    wdtype = jnp.bfloat16 if use_bf16_inputs else weight.dtype
    wp = jnp.pad(weight.astype(wdtype), ((0, Fp - F), (0, Op - O)))
    bp = jnp.pad(bias.astype(jnp.float32), (0, Op - O)).reshape(1, Op)
    return dict(weight=weight, bias=bias, wp=wp, bp=bp,
                F=F, O=O, Fp=Fp, Op=Op, use_bf16_inputs=use_bf16_inputs)


_SMALL_BUDGET_BYTES = 2 * 1024 * 1024


def linear_forward(x, params, *, tm_target=256, tn_target=512, tk_target=512,
                   small_budget_bytes=_SMALL_BUDGET_BYTES):
    """Eval-mode LinearModel forward: x [B, F] -> [B, O] float32."""
    B, F = x.shape
    assert F == params["F"], "feature_dim mismatch between x and params"
    O = params["O"]

    # ---- Small-problem fast path (whole problem in one VMEM block). --------
    footprint = 4 * (B * F + F * O + B * O)
    if footprint <= small_budget_bytes:
        return _small_linear(x, params["weight"], params["bias"])

    # ---- Tiled path. -------------------------------------------------------
    use_bf16 = params["use_bf16_inputs"]
    Fp, Op = params["Fp"], params["Op"]
    in_dtype = jnp.bfloat16 if use_bf16 else x.dtype
    sub = 16 if in_dtype == jnp.bfloat16 else 8          # sublane packing tile

    Bp = _round_up(B, sub)
    tm = _largest_aligned_divisor(Bp, sub, tm_target)
    tk = _largest_aligned_divisor(Fp, 128, tk_target)
    # Collapse the N axis to one tile whenever the padded output width fits:
    # each x row-block then streams from HBM exactly once.
    tn = Op if Op <= max(tn_target, 1024) else _largest_aligned_divisor(
        Op, 128, tn_target)

    xd = x.astype(in_dtype)
    xp = xd if (Bp == B and Fp == F) else jnp.pad(
        xd, ((0, Bp - B), (0, Fp - F)))

    grid = (Bp // tm, Op // tn, Fp // tk)

    # Double-buffered VMEM footprint; only raise the scoped limit if needed
    # (keeps us safe on v7x's 64 MiB physical / 32 MiB default-scoped VMEM).
    bytes_in = 2 if in_dtype == jnp.bfloat16 else 4
    vmem_footprint = 2 * (tm * tk * bytes_in + tk * tn * bytes_in
                          + tn * 4 + tm * tn * 4)
    vmem_limit = None
    if vmem_footprint > 12 * 1024 * 1024:
        vmem_limit = min(2 * vmem_footprint, 32 * 1024 * 1024)

    out_padded = pl.pallas_call(
        _tiled_linear_kernel,
        out_shape=jax.ShapeDtypeStruct((Bp, Op), jnp.float32),
        grid_spec=pltpu.PrefetchScalarGridSpec(
            num_scalar_prefetch=0,
            grid=grid,
            in_specs=[
                pl.BlockSpec((tm, tk), lambda i, j, k: (i, k)),   # x tile
                pl.BlockSpec((tk, tn), lambda i, j, k: (k, j)),   # W tile
                pl.BlockSpec((1, tn), lambda i, j, k: (0, j)),    # bias tile
            ],
            out_specs=pl.BlockSpec((tm, tn), lambda i, j, k: (i, j)),
        ),
        compiler_params=pltpu.CompilerParams(
            dimension_semantics=("parallel", "parallel", "arbitrary"),
            vmem_limit_bytes=vmem_limit,
        ),
    )(xp, params["wp"], params["bp"])

    if Bp == B and Op == O:
        return out_padded
    return out_padded[:B, :O]


def linear_model_forward(x, weight, bias, *, use_bf16_inputs=True, **kwargs):
    """One-shot convenience wrapper (param prep + forward). For repeated calls
    prepare the params once with prepare_linear_params()."""
    params = prepare_linear_params(weight, bias, use_bf16_inputs=use_bf16_inputs)
    return linear_forward(x, params, **kwargs)


if __name__ == "__main__":
    key = jax.random.PRNGKey(0)

    # Shapes consistent with LinearModel(feature_dim, output_dim, dropout),
    # eval mode (dropout = identity).
    batch, feature_dim, output_dim = 8, 32, 8
    k1, k2, k3, key = jax.random.split(key, 4)
    bound = 1.0 / (feature_dim ** 0.5)
    x = jax.random.normal(k1, (batch, feature_dim), dtype=jnp.float32)
    w = jax.random.uniform(k2, (feature_dim, output_dim), jnp.float32,
                           minval=-bound, maxval=bound)
    b = jax.random.uniform(k3, (output_dim,), jnp.float32,
                           minval=-bound, maxval=bound)

    # 1) Small-problem fast path (single block, no padding, exact f32).
    out = jax.block_until_ready(linear_model_forward(x, w, b))
    ref = x @ w + b
    assert out.shape == (batch, output_dim)
    assert jnp.allclose(out, ref, atol=1e-5, rtol=1e-5), "small path mismatch"

    # 2) Tiled f32 path with K accumulation (force tiled path, 2 K steps).
    b2, f2, o2 = 16, 256, 8
    k1, k2, k3, key = jax.random.split(key, 4)
    bound2 = 1.0 / (f2 ** 0.5)
    x2 = jax.random.normal(k1, (b2, f2), dtype=jnp.float32)
    w2 = jax.random.uniform(k2, (f2, o2), jnp.float32,
                            minval=-bound2, maxval=bound2)
    b2v = jax.random.uniform(k3, (o2,), jnp.float32,
                             minval=-bound2, maxval=bound2)
    params_f32 = prepare_linear_params(w2, b2v, use_bf16_inputs=False)
    out2 = jax.block_until_ready(
        linear_forward(x2, params_f32, tk_target=128, small_budget_bytes=0))
    ref2 = x2 @ w2 + b2v
    assert out2.shape == (b2, o2)
    assert jnp.allclose(out2, ref2, atol=1e-4, rtol=1e-4), "tiled f32 mismatch"

    # 3) Tiled bf16 fast path (f32 accumulation), non-divisible shapes
    #    exercising the pad + slice logic (bf16 -> looser tolerance).
    b3, f3, o3 = 20, 300, 10
    k1, k2, k3, key = jax.random.split(key, 4)
    bound3 = 1.0 / (f3 ** 0.5)
    x3 = jax.random.normal(k1, (b3, f3), dtype=jnp.float32)
    w3 = jax.random.uniform(k2, (f3, o3), jnp.float32,
                            minval=-bound3, maxval=bound3)
    b3v = jax.random.uniform(k3, (o3,), jnp.float32,
                             minval=-bound3, maxval=bound3)
    params_bf16 = prepare_linear_params(w3, b3v, use_bf16_inputs=True)
    out3 = jax.block_until_ready(
        linear_forward(x3, params_bf16, small_budget_bytes=0))
    ref3 = x3 @ w3 + b3v
    assert out3.shape == (b3, o3)
    assert jnp.allclose(out3, ref3, atol=5e-2, rtol=5e-2), "tiled bf16 mismatch"

    print("KERNEL_OK")
</pallas_src>

<mosaic_0001>
module attributes {stable_mosaic.version = 11 : i64} {
  func.func @_small_linear_kernel(%arg0: memref<8x32xf32, #tpu.memory_space<vmem>>, %arg1: memref<32x8xf32, #tpu.memory_space<vmem>>, %arg2: memref<1x8xf32, #tpu.memory_space<vmem>>, %arg3: memref<8x8xf32, #tpu.memory_space<vmem>>) attributes {dimension_semantics = [], scalar_prefetch = 0 : i64, scratch_operands = 0 : i64, tpu.core_type = #tpu.core_type<tc>} {
    %c0 = arith.constant 0 : index
    %c0_0 = arith.constant 0 : index
    %0 = vector.load %arg0[%c0, %c0_0] : memref<8x32xf32, #tpu.memory_space<vmem>>, vector<8x32xf32>
    %c0_1 = arith.constant 0 : index
    %c0_2 = arith.constant 0 : index
    %1 = vector.load %arg1[%c0_1, %c0_2] : memref<32x8xf32, #tpu.memory_space<vmem>>, vector<32x8xf32>
    %cst = arith.constant dense<0.000000e+00> : vector<8x8xf32>
    %2 = tpu.matmul %0, %1, %cst {dimension_numbers = #tpu.dot_dimension_numbers<[1], [0], [0], [1], [0, 0, 1, 1], [], []>} : vector<8x32xf32>, vector<32x8xf32>, vector<8x8xf32> -> vector<8x8xf32>
    %c0_3 = arith.constant 0 : index
    %c0_4 = arith.constant 0 : index
    %3 = vector.load %arg2[%c0_3, %c0_4] : memref<1x8xf32, #tpu.memory_space<vmem>>, vector<1x8xf32>
    %4 = vector.broadcast %3 : vector<1x8xf32> to vector<8x8xf32>
    %5 = arith.addf %2, %4 : vector<8x8xf32>
    %c0_5 = arith.constant 0 : index
    %c0_6 = arith.constant 0 : index
    %6 = vector.load %arg3[%c0_5, %c0_6] : memref<8x8xf32, #tpu.memory_space<vmem>>, vector<8x8xf32>
    tpu.vector_store %arg3[%c0_5, %c0_6], %5 {strides = array<i32>} : memref<8x8xf32, #tpu.memory_space<vmem>>, vector<8x8xf32>,
    return
  }
}

</mosaic_0001>

<bundles_post_ra>
// kernel: tpu_custom_call.1
= control target key start
LH: loop header
LB: loop body
LE: loop exit
PB: predicated region body
PF: predicated region fallthrough
CT: control target
= control target key end

     0   :  { %v169_v3 = vmov 0.0|0.0   ;;  %vm170_vm0 = vmmov 0   ;;  %v171_v6 = vmov 0.0   ;;  %s223_s0 = inlined_call_operand.vmem [shape: f32[8,32], index: 0, kind: input, shape index: {}]   ;;  %s224_s1 = inlined_call_operand.vmem [shape: f32[32,8], index: 1, kind: input, shape index: {}]   ;;  %s225_s2 = inlined_call_operand.vmem [shape: f32[1,8], index: 2, kind: input, shape index: {}]   ;;  %s226_s3 = inlined_call_operand.hbm [shape: f32[8,8], index: 3, kind: output, shape index: {}]  }
   0x1   :  { %v16_v0 = vld [vmem:[%s224_s1] sm:$0xff]  ;;  %v17_v1 = vld [vmem:[%s224_s1 + $0x8] sm:$0xff]  ;;  %v18_v2 = vld [vmem:[%s224_s1 + $0x10] sm:$0xff]  ;;  %135 = vmatprep.subr.bf16.mxu0 %v169_v3  ;;  %132 = vmatprep.mubr.msk.f32.mxu0 %vm170_vm0, %v171_v6 }
   0x2   :  { %v136_v4 = vpack.c.bf16 %v17_v1, %v16_v0  ;;  %v19_v5 = vld [vmem:[%s224_s1 + $0x18] sm:$0xff] }
   0x3   :  { %8 = vsyncpa [#allocation3], 0  ;;  %v139_v7 = vpack.c.bf16 %v19_v5, %v18_v2  ;;  %v15_v8 = vld [vmem:[%s223_s0] sm:$0xff]  ;;  %vm27_vm1 = vcmask 261120   ;;  %s172_s24 = smov [#allocation2]   ;;  %vm101_vm2 = vcmask 64512  }
   0x4   :  { %137 = vmatpush3.bf16.msra.mxu0 %v136_v4  ;;  %v117_v9 = vld [vmem:[%s225_s2] ss:$0 sm:$0xff]  ;;  %s109_s1 = sshll.u32 %s172_s24, 4  ;;  %s110_s1 = int_to_ptr.vmem [resolvable:$true] %s109_s1 }
   0x5   :  { %138 = vmatprep.subr.bf16.mxu0 %v169_v3  ;;  %s145_s25 = scalar_lea.vmem %s110_s1, 128  ;;  %p150_p1 = scmp.lt.s32.totalorder %s110_s1, %s110_s1 }
   0x6   :  { %p146_p0 = scmp.ne.s32.totalorder %s110_s1, %s145_s25  ;;  %p151_p2 = scmp.lt.s32.totalorder %s145_s25, %s145_s25 }
   0x8   :  { %140 = vmatpush3.bf16.msra.mxu0 %v139_v7  ;;  %p152_p3 = por %p151_p2, %p150_p1 }
   0xa   :  { %p153_p4 = pnand %p152_p3, %p146_p0 }
   0xb   :  { %133 = vmatmul.mubr.msk.f32.vlgmr.msra.gmra.mrb[0].mxu0 %vm27_vm1, %v15_v8 }
  0xde   :  { %v97_v10 = vpop.f32.mrb[0].mxu0 }
  0xdf   :  { %v98_v11 = vadd.f32 %v117_v9, %v97_v10  ;;  %v134_v12 = vpop.f32.mrb[1].mxu0 }
  0xe1   :  { %102 = vst.msk [vmem:[#allocation2] sm:$0xff] %vm101_vm2, %v98_v11 }
  0xe2   :  { %156 = shalt.err (!%p153_p4)
}
  0xe3   :  { %s157_s27 = scalar_lea.hbm %s226_s3, 128 }
  0xe4   :  { %p158_p5 = scmp.ne.s32.totalorder %s226_s3, %s157_s27  ;;  %p161_p6 = scmp.lt.u32.totalorder %s157_s27, %s226_s3 }
  0xe6   :  { %p163_p7 = pnand %p161_p6, %p158_p5 }
  0xe8   :  { %166 = shalt.err (!%p163_p7)
}
  0xe9   :  { %112 = dma.vmem_to_hbm [thread:$0]  %s110_s1, 128, %s226_s3, [#allocation3]  }
  0xea   :  { %167 = dma.done.wait [#allocation3], 128  }
  0xeb   :  { %168 = vsyncadd [#allocation3], 4294967168 }
  0xec   :  { %116 = vsyncpa [#allocation3], 1 }

</bundles_post_ra>
